<compile_context>
chip_gen: v6e
topology: v6e:2x2x1
jax: 0.10.0
libtpu: 0.0.40
codegen_flags: <defaults>
</compile_context>

<pallas_src>
import jax
import jax.numpy as jnp
from jax.experimental import pallas as pl
from jax.experimental.pallas import tpu as pltpu

EPS = 1e-5


def net_kernel(x_ref, w1_ref, b1_ref, w2_ref, b2_ref, o_ref):
    # ---- fc1 (BN folded): cast x->bf16 in-kernel, bf16 MXU matmul, f32 acc ----
    x_bf16 = x_ref[...].astype(jnp.bfloat16)               # VPU cast, hidden under DMA
    h = jnp.dot(x_bf16, w1_ref[...],
                preferred_element_type=jnp.float32)        # (TB, 256) f32

    # ---- folded BN + bias, ReLU (f32 VPU) ----
    h = jnp.maximum(h + b1_ref[...], 0.0)

    # ---- fc2: Dropout (eval => identity) -> Linear(256 -> 1) as VPU mul + lane reduce ----
    out = jnp.sum(h * w2_ref[...], axis=-1, keepdims=True) + b2_ref[...]   # (TB, 1)

    # ---- final ReLU ----
    o_ref[...] = jnp.maximum(out, 0.0)


def _round_up(n, m):
    return ((n + m - 1) // m) * m


def _pick_tb(batch, tb_max=2048):
    """Batch tile: multiple of 8 (f32 sublanes), aims for >= 8 grid steps
    (v7x megacore + pipeline overlap) while never exceeding the VMEM budget."""
    tb_max = max(128, _round_up(tb_max, 128))
    tb = min(_round_up(pl.cdiv(batch, 8), 128), tb_max)      # ~8 steps, MXU-friendly
    tb = min(tb, _round_up(pl.cdiv(batch, 2), 8))            # small B: still >= 2 steps
    return max(tb, 8)


def fold_params(params):
    """Fold eval-mode BatchNorm into fc1's weight/bias; prep fc2 as a row vector."""
    w1, b1, gamma, beta, mean, var, w2, b2 = params
    inv_std = gamma * jax.lax.rsqrt(var + EPS)                 # (1, 256)
    w1f = (w1 * inv_std).astype(jnp.bfloat16)                  # (1024, 256) bf16 for MXU
    b1f = ((b1 - mean) * inv_std + beta).astype(jnp.float32)   # (1, 256)
    w2r = w2.reshape(1, -1).astype(jnp.float32)                # (1, 256)
    b2r = b2.reshape(1, 1).astype(jnp.float32)                 # (1, 1)
    return w1f, b1f, w2r, b2r


def net_forward(x, params, *, tb_max=2048):
    """x: (B, 1024) float32. Returns (B, 1) float32."""
    B, K = x.shape
    w1f, b1f, w2r, b2r = fold_params(params)
    N = w1f.shape[1]

    TB = _pick_tb(B, tb_max)
    grid = pl.cdiv(B, TB)      # partial last block handled by Pallas edge clipping

    # Advisory cost hint for XLA's scheduler around the custom call.
    flops = 2 * B * K * N + 4 * B * N
    bytes_accessed = B * K * 4 + K * N * 2 + 2 * N * 4 + 4 + B * 4

    out = pl.pallas_call(
        net_kernel,
        out_shape=jax.ShapeDtypeStruct((B, 1), jnp.float32),
        grid_spec=pltpu.PrefetchScalarGridSpec(
            num_scalar_prefetch=0,
            grid=(grid,),
            in_specs=[
                pl.BlockSpec((TB, K), lambda i: (i, 0)),   # x tile (f32): pipelined over batch
                pl.BlockSpec((K, N), lambda i: (0, 0)),    # folded fc1 weight (bf16): resident
                pl.BlockSpec((1, N), lambda i: (0, 0)),    # folded fc1 bias
                pl.BlockSpec((1, N), lambda i: (0, 0)),    # fc2 weight row
                pl.BlockSpec((1, 1), lambda i: (0, 0)),    # fc2 bias
            ],
            out_specs=pl.BlockSpec((TB, 1), lambda i: (i, 0)),
        ),
        compiler_params=pltpu.CompilerParams(
            dimension_semantics=("parallel",),             # shards steps over v7x's 2 TCs
            vmem_limit_bytes=48 * 1024 * 1024,             # fits f32 x tiles; safe on all gens
        ),
        cost_estimate=pl.CostEstimate(
            flops=flops, transcendentals=0, bytes_accessed=bytes_accessed),
    )(x, w1f, b1f, w2r, b2r)

    return out


def init_params(key):
    """Deterministic parameter init matching the PyTorch module's shapes.

    PyTorch Linear(1024, 256) has weight (256, 1024); we store its transpose
    (1024, 256) so the kernel can do x @ W directly. Biases / BN params are
    kept 2D (1, C) for TPU-friendly layouts.
    """
    k1, k2, k3, k4 = jax.random.split(key, 4)
    w1 = jax.random.normal(k1, (1024, 256), jnp.float32) * 0.02
    b1 = jax.random.normal(k2, (1, 256), jnp.float32) * 0.01
    gamma = jnp.ones((1, 256), jnp.float32)
    beta = jnp.zeros((1, 256), jnp.float32)
    running_mean = jnp.zeros((1, 256), jnp.float32)
    running_var = jnp.ones((1, 256), jnp.float32)
    w2 = jax.random.normal(k3, (256, 1), jnp.float32) * 0.05
    b2 = jax.random.normal(k4, (1, 1), jnp.float32) * 0.01
    return (w1, b1, gamma, beta, running_mean, running_var, w2, b2)


def reference_forward(x, params):
    """Pure-JAX reference mirroring the kernel's numerics (folded BN, bf16 matmul)."""
    w1f, b1f, w2r, b2r = fold_params(params)
    h = jnp.dot(x.astype(jnp.bfloat16), w1f,
                preferred_element_type=jnp.float32) + b1f
    h = jnp.maximum(h, 0.0)
    out = jnp.sum(h * w2r, axis=-1, keepdims=True) + b2r
    return jnp.maximum(out, 0.0)


if __name__ == "__main__":
    key = jax.random.PRNGKey(0)
    kx, kp = jax.random.split(key)

    B = 32                                  # small batch; TB=16 -> 2-step grid
    x = jax.random.normal(kx, (B, 1024), jnp.float32)
    params = init_params(kp)

    out = net_forward(x, params)
    out = jax.block_until_ready(out)

    ref = reference_forward(x, params)
    assert out.shape == (B, 1), out.shape
    assert jnp.allclose(out, ref, atol=1e-3, rtol=1e-3), "mismatch vs reference"

    print("KERNEL_OK")
</pallas_src>

<mosaic_0001>
module attributes {stable_mosaic.version = 11 : i64} {
  func.func @net_kernel(%arg0: i32, %arg1: memref<16x1024xf32, #tpu.memory_space<vmem>>, %arg2: memref<1024x256xbf16, #tpu.memory_space<vmem>>, %arg3: memref<1x256xf32, #tpu.memory_space<vmem>>, %arg4: memref<1x256xf32, #tpu.memory_space<vmem>>, %arg5: memref<1x1xf32, #tpu.memory_space<vmem>>, %arg6: memref<16x1xf32, #tpu.memory_space<vmem>>) attributes {dimension_semantics = [#tpu.dimension_semantics<parallel>], iteration_bounds = array<i64: 2>, scalar_prefetch = 0 : i64, scratch_operands = 0 : i64, tpu.core_type = #tpu.core_type<tc>, window_params = [{transform_indices = @transform_0, window_bounds = array<i64: 16, 1024>}, {pipeline_mode = #tpu.pipeline_mode<synchronous>, transform_indices = @transform_1, window_bounds = array<i64: 1024, 256>}, {pipeline_mode = #tpu.pipeline_mode<synchronous>, transform_indices = @transform_2, window_bounds = array<i64: 1, 256>}, {pipeline_mode = #tpu.pipeline_mode<synchronous>, transform_indices = @transform_3, window_bounds = array<i64: 1, 256>}, {pipeline_mode = #tpu.pipeline_mode<synchronous>, transform_indices = @transform_4, window_bounds = array<i64: 1, 1>}, {transform_indices = @transform_5, window_bounds = array<i64: 16, 1>}]} {
    %c0 = arith.constant 0 : index
    %c0_0 = arith.constant 0 : index
    %0 = vector.load %arg1[%c0, %c0_0] : memref<16x1024xf32, #tpu.memory_space<vmem>>, vector<16x1024xf32>
    %1 = arith.truncf %0 : vector<16x1024xf32> to vector<16x1024xbf16>
    %c0_1 = arith.constant 0 : index
    %c0_2 = arith.constant 0 : index
    %2 = vector.load %arg2[%c0_1, %c0_2] : memref<1024x256xbf16, #tpu.memory_space<vmem>>, vector<1024x256xbf16>
    %cst = arith.constant dense<0.000000e+00> : vector<16x256xf32>
    %3 = tpu.matmul %1, %2, %cst {dimension_numbers = #tpu.dot_dimension_numbers<[1], [0], [0], [1], [0, 0, 1, 1], [], []>} : vector<16x1024xbf16>, vector<1024x256xbf16>, vector<16x256xf32> -> vector<16x256xf32>
    %c0_3 = arith.constant 0 : index
    %c0_4 = arith.constant 0 : index
    %4 = vector.load %arg3[%c0_3, %c0_4] : memref<1x256xf32, #tpu.memory_space<vmem>>, vector<1x256xf32>
    %5 = vector.broadcast %4 : vector<1x256xf32> to vector<16x256xf32>
    %6 = arith.addf %3, %5 : vector<16x256xf32>
    %cst_5 = arith.constant 0.000000e+00 : f32
    %7 = vector.broadcast %cst_5 : f32 to vector<16x256xf32>
    %8 = arith.maximumf %6, %7 : vector<16x256xf32>
    %c0_6 = arith.constant 0 : index
    %c0_7 = arith.constant 0 : index
    %9 = vector.load %arg4[%c0_6, %c0_7] : memref<1x256xf32, #tpu.memory_space<vmem>>, vector<1x256xf32>
    %10 = vector.broadcast %9 : vector<1x256xf32> to vector<16x256xf32>
    %11 = arith.mulf %8, %10 : vector<16x256xf32>
    %cst_8 = arith.constant dense<0.000000e+00> : vector<16xf32>
    %12 = vector.multi_reduction <add>, %11, %cst_8 [1] : vector<16x256xf32> to vector<16xf32>
    %13 = vector.shape_cast %12 : vector<16xf32> to vector<16x1xf32>
    %c0_9 = arith.constant 0 : index
    %c0_10 = arith.constant 0 : index
    %14 = vector.load %arg5[%c0_9, %c0_10] : memref<1x1xf32, #tpu.memory_space<vmem>>, vector<1x1xf32>
    %15 = vector.broadcast %14 : vector<1x1xf32> to vector<16x1xf32>
    %16 = arith.addf %13, %15 : vector<16x1xf32>
    %cst_11 = arith.constant 0.000000e+00 : f32
    %17 = vector.broadcast %cst_11 : f32 to vector<16x1xf32>
    %18 = arith.maximumf %16, %17 : vector<16x1xf32>
    %c0_12 = arith.constant 0 : index
    %c0_13 = arith.constant 0 : index
    %19 = vector.load %arg6[%c0_12, %c0_13] : memref<16x1xf32, #tpu.memory_space<vmem>>, vector<16x1xf32>
    tpu.vector_store %arg6[%c0_12, %c0_13], %18 {strides = array<i32>} : memref<16x1xf32, #tpu.memory_space<vmem>>, vector<16x1xf32>,
    return
  }
  func.func @transform_0(%arg0: i32) -> (i32, i32) {
    %c0_i32 = arith.constant 0 : i32
    %c0_i32_0 = arith.constant 0 : i32
    return %arg0, %c0_i32 : i32, i32
  }
  func.func @transform_1(%arg0: i32) -> (i32, i32) {
    %c0_i32 = arith.constant 0 : i32
    %c0_i32_0 = arith.constant 0 : i32
    %c0_i32_1 = arith.constant 0 : i32
    return %c0_i32, %c0_i32_0 : i32, i32
  }
  func.func @transform_2(%arg0: i32) -> (i32, i32) {
    %c0_i32 = arith.constant 0 : i32
    %c0_i32_0 = arith.constant 0 : i32
    %c0_i32_1 = arith.constant 0 : i32
    return %c0_i32, %c0_i32_0 : i32, i32
  }
  func.func @transform_3(%arg0: i32) -> (i32, i32) {
    %c0_i32 = arith.constant 0 : i32
    %c0_i32_0 = arith.constant 0 : i32
    %c0_i32_1 = arith.constant 0 : i32
    return %c0_i32, %c0_i32_0 : i32, i32
  }
  func.func @transform_4(%arg0: i32) -> (i32, i32) {
    %c0_i32 = arith.constant 0 : i32
    %c0_i32_0 = arith.constant 0 : i32
    %c0_i32_1 = arith.constant 0 : i32
    return %c0_i32, %c0_i32_0 : i32, i32
  }
  func.func @transform_5(%arg0: i32) -> (i32, i32) {
    %c0_i32 = arith.constant 0 : i32
    %c0_i32_0 = arith.constant 0 : i32
    return %arg0, %c0_i32 : i32, i32
  }
}

</mosaic_0001>

<bundles_post_ra>
// kernel: tpu_custom_call.1
= control target key start
LH: loop header
LB: loop body
LE: loop exit
PB: predicated region body
PF: predicated region fallthrough
CT: control target
= control target key end

     0   :  { %s2037_s0 = inlined_call_operand.hbm [shape: f32[32,1024], index: 0, kind: input, shape index: {}]   ;;  %s2038_s1 = inlined_call_operand.hbm [shape: bf16[1024,256], index: 1, kind: input, shape index: {}]   ;;  %s2039_s2 = inlined_call_operand.vmem [shape: f32[1,256], index: 2, kind: input, shape index: {}]   ;;  %s2040_s3 = inlined_call_operand.vmem [shape: f32[1,256], index: 3, kind: input, shape index: {}]   ;;  %s2041_s4 = inlined_call_operand.<no memory space> [shape: f32[1,1], index: 4, kind: input, shape index: {}]   ;;  %s2042_s5 = inlined_call_operand.vmem [shape: f32[32,1], index: 5, kind: output, shape index: {}]  }
   0x1   :  { %v10_v0 = vstv %s2041_s4 }
   0x2   :  { %11 = vst [vmem:[#allocation2] sm:$0x1] %v10_v0 }
   0x3   :  { %12 = vsyncpa [#allocation4], 0 }
   0x4   :  { %14 = vsyncpa [#allocation4 + $0x1], 0 }
   0x5   :  { %15 = vsyncpa [#allocation6], 0  ;;  %s1884_s20 = smov 0   ;;  %s1886_s21 = smov 0  }
   0x6   :  { %s1888_s22 = smov 0   ;;  %s1890_s23 = smov 0  }
   0x7 LB: > { %s1358_s4 = sadd.s32 4294967295, %s1843_s23   ;;  %p41_p0 = scmp.ne.s32.totalorder %s1835_s21, %s1831_s20  ;;  %s1843_s23 = sphi %s1890_s23, %s2058_s23   ;;  %s1839_s22 = sphi %s1888_s22, %s2057_s22   ;;  %s1835_s21 = sphi %s1886_s21, %s2056_s21   ;;  %s1831_s20 = sphi %s1884_s20, %s2055_s20  }
   0x8   : > { %p1906_p1 = scmp.eq.s32.totalorder %s1358_s4, 0  ;;  %p1360_p2 = scmp.ge.s32.totalorder %s1843_s23, 1 }
   0x9   : > { %p162_p3 = scmp.lt.s32.totalorder %s1843_s23, 3  ;;  %s1845_s27 = smov [#allocation5]  }
   0xa   : > { %s2047_s24 = scalar_select %p1906_p1, 1, 0 }
   0xb   : > { %p1914_p4 = por %p1906_p1, %p41_p0  ;;  %p1918_p5 = pnand %p1360_p2, %p162_p3 }
   0xc   : > { %s174_s28 = sshll.u32 %s1845_s27, 4  ;;  %s1931_s30 = sadd.s32 1, %s1843_s23   ;;  %s175_s28 = int_to_ptr.vmem [resolvable:$true] %s174_s28 }
   0xd   : > { %s2048_s25 = scalar_select %p1914_p4, 1, 0 }
   0xe   : > { %s2049_s26 = scalar_select %p1918_p5, 1, 0 }
   0xf   : > { %p1511_p6 = pneg %p1918_p5  ;;  %s28_s6 = sadd.s32 1, %s1839_s22 }
  0x10   : > { %s25_s7 = ssub.s32 %s1843_s23, %s1931_s30  ;;  %s1762_s8 = scalar_lea.vmem %s175_s28, 16384 }
  0x11   : > { %p1926_p7 = pnand %p1511_p6, %p1906_p1  ;;  %p1763_p9 = scmp.ne.s32.totalorder %s175_s28, %s1762_s8 }
  0x12   : > { %p1770_p12 = scmp.lt.s32.totalorder %s175_s28, %s175_s28  ;;  %p1771_p13 = scmp.lt.s32.totalorder %s1762_s8, %s1762_s8 }
  0x13   : > { %p1753_p8 = pneg %p1926_p7 }
  0x14   : > { %p1772_p0 = por %p1771_p13, %p1770_p12 }
  0x15   : > { %p1765_p10 = pnand %p1763_p9, %p1753_p8 }
  0x17   : > { %p1766_p11 = pneg %p1765_p10 }
  0x19   : > { %p1773_p2 = pnand %p1772_p0, %p1766_p11 }
  0x1b   : > { %1776 = shalt.err (!%p1773_p2)
}
  0x1c   : > { %s1846_s9 = smov 128   ;;  %s1847_s10 = smov 8  }
  0x1d   : > { %1514 = dma.hbm_to_vmem [thread:$0]  (!%p1926_p7), %s2038_s1, 16384, %s175_s28, [#allocation6], %s1846_s9, %s1846_s9, %s1847_s10  }
  0x1e   : > { %p26_p3 = scmp.eq.s32.totalorder %s25_s7, 0  ;;  %p35_p6 = scmp.ne.s32.totalorder %s1839_s22, %s1835_s21 }
  0x1f   : > { %p36_p8 = scmp.eq.s32.totalorder %s1843_s23, 0  ;;  %p1520_p9 = scmp.lt.s32.totalorder %s1843_s23, 2 }
  0x20   : > { %s1948_s13 = scalar_select %p26_p3, %s1839_s22, %s28_s6  }
  0x21   : > { %p37_p10 = por %p36_p8, %p35_p6  ;;  %s197_s14 = sand.u32 1, %s1839_s22  }
  0x22   : > { %s1363_s15 = sshll.u32 %s197_s14, 7  ;;  %s1504_s16 = sshll.u32 %s1843_s23, 11 }
  0x23   : > { %s1955_s19 = scalar_lea.hbm %s2037_s0, %s1504_s16  ;;  %s201_s20 = scalar_lea.vmem [#allocation3], %s1363_s15 }
  0x24   : > { %s209_s27 = sshll.u32 %s201_s20, 4  ;;  %p1959_p7 = pnand %p1520_p9, %p37_p10  ;;  %s1957_s27 = int_to_ptr.vmem [resolvable:$true] %s209_s27 }
  0x25   : > { %s1963_s29 = scalar_lea.sflag [#allocation4], %s197_s14  ;;  %s1777_s6 = scalar_lea.hbm %s1955_s19, 2048 }
  0x26   : > { %p1778_p11 = scmp.ne.s32.totalorder %s1955_s19, %s1777_s6  ;;  %p1779_p12 = pneg %p1959_p7 }
  0x27   : > { %s1782_s9 = scalar_lea.hbm %s2037_s0, 4096  ;;  %p1783_p2 = scmp.lt.s32.totalorder %s1955_s19, %s2037_s0 }
  0x28   : > { %p1780_p13 = pnand %p1779_p12, %p1778_p11  ;;  %p1784_p3 = scmp.lt.s32.totalorder %s1782_s9, %s1777_s6 }
  0x2a   : > { %p1781_p0 = pneg %p1780_p13  ;;  %p1785_p6 = por %p1784_p3, %p1783_p2 }
  0x2c   : > { %p1786_p8 = pnand %p1785_p6, %p1781_p0 }
  0x2e   : > { %1789 = shalt.err (!%p1786_p8)
}
  0x2f   : > { %s1790_s12 = scalar_lea.vmem %s1957_s27, 2048  ;;  %s1848_s14 = smov [#allocation3]  }
  0x30   : > { %p1791_p9 = scmp.ne.s32.totalorder %s1957_s27, %s1790_s12  ;;  %s1795_s15 = sshll.u32 %s1848_s14, 4  ;;  %s1796_s15 = int_to_ptr.vmem [resolvable:$false] %s1795_s15 }
  0x31   : > { %s1797_s16 = scalar_lea.vmem %s1796_s15, 4096  ;;  %p1798_p13 = scmp.lt.s32.totalorder %s1957_s27, %s1796_s15 }
  0x32   : > { %p1793_p10 = pnand %p1791_p9, %p1779_p12  ;;  %p1799_p1 = scmp.lt.s32.totalorder %s1797_s16, %s1790_s12 }
  0x34   : > { %p1794_p11 = pneg %p1793_p10  ;;  %p1800_p4 = por %p1799_p1, %p1798_p13 }
  0x36   : > { %p1801_p5 = pnand %p1800_p4, %p1794_p11 }
  0x38   : > { %1804 = shalt.err (!%p1801_p5)
}
  0x39   : > { %s1849_s17 = smov 1024   ;;  %s1850_s18 = smov 64  }
  0x3a   : > { %1518 = dma.hbm_to_vmem [thread:$0]  (!%p1959_p7), %s1955_s19, 2048, %s1957_s27, %s1963_s29, %s1849_s17, %s1849_s17, %s1850_s18  }
  0x3b   : > { %p2052_p12 = scmp.ne.s32.totalorder %s2049_s26, 0 }
  0x3c   : > { %s223_s20 = sand.u32 (!%p2052_p12), 1, %s1835_s21   ;;  %p2053_p1 = scmp.ne.s32.totalorder (!%p2052_p12), %s2048_s25, 0 }
  0x3d   : > { %221 = sbr.rel (%p2052_p12) target bundleno = 551 (0x227), region = 40  ;;  %s1368_s6 = sshll.u32 (!%p2052_p12), %s223_s20, 7 }
  0x3e   : > { %s224_s7 = scalar_lea.sflag (!%p2052_p12), [#allocation4], %s223_s20  ;;  %s1987_s8 = scalar_lea.vmem (!%p2052_p12), [#allocation3], %s1368_s6 }
  0x42   : > { %1822 = dma.done.wait (%p2053_p1), %s224_s7, 2048  }
  0x43   : > { %1824 = vsyncadd (%p2053_p1), %s224_s7, 4294965248  ;;  %p2054_p4 = scmp.ne.s32.totalorder %s2047_s24, 0 }
  0x45   : > { %1826 = dma.done.wait (%p2054_p4), [#allocation6], 16384  }
  0x46   : > { %1828 = vsyncadd (%p2054_p4), [#allocation6], 4294950912  ;;  %v1559_v1 = vld [vmem:[#allocation5 + $0x74] ss:$8 sps:$4 sm:$0xff]   ;;  %v1563_v3 = vld [vmem:[#allocation5 + $0x70] ss:$8 sps:$4 sm:$0xff]  }
  0x47   : > { %v1561_v2 = vld [vmem:[#allocation5 + $0x174] ss:$8 sps:$4 sm:$0xff]   ;;  %1069 = vmatprep.subr.bf16.mxu0 %v1559_v1  ;;  %v1564_v4 = vld [vmem:[#allocation5 + $0x170] ss:$8 sps:$4 sm:$0xff]   ;;  %v1565_v5 = vld [vmem:[#allocation5 + $0x64] ss:$8 sps:$4 sm:$0xff]  }
  0x48   : > { %1112 = vmatprep.subr.bf16.mxu1 %v1561_v2  ;;  %1070 = vmatpush1.bf16.msra.mxu0 %v1563_v3  ;;  %v1567_v6 = vld [vmem:[#allocation5 + $0x164] ss:$8 sps:$4 sm:$0xff]   ;;  %v1569_v7 = vld [vmem:[#allocation5 + $0x60] ss:$8 sps:$4 sm:$0xff]   ;;  %v1571_v9 = vld [vmem:[#allocation5 + $0x54] ss:$8 sps:$4 sm:$0xff]  }
  0x49   : > { %1113 = vmatpush1.bf16.msra.mxu1 %v1564_v4  ;;  %1071 = vmatprep.subr.bf16.mxu0 %v1565_v5  ;;  %v1570_v8 = vld [vmem:[#allocation5 + $0x160] ss:$8 sps:$4 sm:$0xff]   ;;  %v1573_v10 = vld [vmem:[#allocation5 + $0x154] ss:$8 sps:$4 sm:$0xff]   ;;  %v1575_v11 = vld [vmem:[#allocation5 + $0x50] ss:$8 sps:$4 sm:$0xff]  }
  0x4a   : > { %1114 = vmatprep.subr.bf16.mxu1 %v1567_v6  ;;  %v1576_v12 = vld [vmem:[#allocation5 + $0x150] ss:$8 sps:$4 sm:$0xff]   ;;  %v1577_v13 = vld [vmem:[#allocation5 + $0x44] ss:$8 sps:$4 sm:$0xff]   ;;  %v1581_v15 = vld [vmem:[#allocation5 + $0x40] ss:$8 sps:$4 sm:$0xff]  }
  0x4b   : > { %v1579_v14 = vld [vmem:[#allocation5 + $0x144] ss:$8 sps:$4 sm:$0xff]   ;;  %v1582_v16 = vld [vmem:[#allocation5 + $0x140] ss:$8 sps:$4 sm:$0xff]   ;;  %v1583_v17 = vld [vmem:[#allocation5 + $0x34] ss:$8 sps:$4 sm:$0xff]  }
  0x4c   : > { %1072 = vmatpush1.bf16.msra.mxu0 %v1569_v7  ;;  %v1585_v18 = vld [vmem:[#allocation5 + $0x134] ss:$8 sps:$4 sm:$0xff]   ;;  %v1587_v19 = vld [vmem:[#allocation5 + $0x30] ss:$8 sps:$4 sm:$0xff]   ;;  %v1589_v21 = vld [vmem:[#allocation5 + $0x24] ss:$8 sps:$4 sm:$0xff]  }
  0x4d   : > { %1115 = vmatpush1.bf16.msra.mxu1 %v1570_v8  ;;  %1073 = vmatprep.subr.bf16.mxu0 %v1571_v9  ;;  %v1588_v20 = vld [vmem:[#allocation5 + $0x130] ss:$8 sps:$4 sm:$0xff]   ;;  %v1591_v22 = vld [vmem:[#allocation5 + $0x124] ss:$8 sps:$4 sm:$0xff]   ;;  %v1593_v23 = vld [vmem:[#allocation5 + $0x20] ss:$8 sps:$4 sm:$0xff]  }
  0x4e   : > { %1116 = vmatprep.subr.bf16.mxu1 %v1573_v10  ;;  %v1594_v24 = vld [vmem:[#allocation5 + $0x120] ss:$8 sps:$4 sm:$0xff]   ;;  %v1595_v25 = vld [vmem:[#allocation5 + $0x14] ss:$8 sps:$4 sm:$0xff]   ;;  %v1599_v27 = vld [vmem:[#allocation5 + $0x10] ss:$8 sps:$4 sm:$0xff]  }
  0x4f   : > { %v1597_v26 = vld [vmem:[#allocation5 + $0x114] ss:$8 sps:$4 sm:$0xff]   ;;  %v1600_v28 = vld [vmem:[#allocation5 + $0x110] ss:$8 sps:$4 sm:$0xff]   ;;  %v1601_v29 = vld [vmem:[#allocation5 + $0x4] ss:$8 sps:$4 sm:$0xff]  }
  0x50   : > { %1074 = vmatpush1.bf16.msra.mxu0 %v1575_v11  ;;  %v1603_v30 = vld [vmem:[#allocation5 + $0x104] ss:$8 sps:$4 sm:$0xff]   ;;  %v1605_v31 = vld [vmem:[#allocation5] ss:$8 sps:$4 sm:$0xff]   ;;  %v1607_v33 = vld [vmem:[#allocation5 + $0xf4] ss:$8 sps:$4 sm:$0xff]  }
  0x51   : > { %1117 = vmatpush1.bf16.msra.mxu1 %v1576_v12  ;;  %1075 = vmatprep.subr.bf16.mxu0 %v1577_v13  ;;  %v1606_v32 = vld [vmem:[#allocation5 + $0x100] ss:$8 sps:$4 sm:$0xff]   ;;  %v1609_v34 = vld [vmem:[#allocation5 + $0x1f4] ss:$8 sps:$4 sm:$0xff]   ;;  %v1611_v35 = vld [vmem:[#allocation5 + $0xf0] ss:$8 sps:$4 sm:$0xff]  }
  0x52   : > { %1118 = vmatprep.subr.bf16.mxu1 %v1579_v14  ;;  %v1612_v36 = vld [vmem:[#allocation5 + $0x1f0] ss:$8 sps:$4 sm:$0xff]   ;;  %v1613_v37 = vld [vmem:[#allocation5 + $0xe4] ss:$8 sps:$4 sm:$0xff]   ;;  %v1617_v39 = vld [vmem:[#allocation5 + $0xe0] ss:$8 sps:$4 sm:$0xff]  }
  0x53   : > { %v1615_v38 = vld [vmem:[#allocation5 + $0x1e4] ss:$8 sps:$4 sm:$0xff]   ;;  %v1618_v40 = vld [vmem:[#allocation5 + $0x1e0] ss:$8 sps:$4 sm:$0xff]   ;;  %v1619_v41 = vld [vmem:[#allocation5 + $0xd4] ss:$8 sps:$4 sm:$0xff]  }
  0x54   : > { %1076 = vmatpush1.bf16.msra.mxu0 %v1581_v15  ;;  %v1621_v42 = vld [vmem:[#allocation5 + $0x1d4] ss:$8 sps:$4 sm:$0xff]   ;;  %v1623_v43 = vld [vmem:[#allocation5 + $0xd0] ss:$8 sps:$4 sm:$0xff]   ;;  %v1625_v45 = vld [vmem:[#allocation5 + $0xc4] ss:$8 sps:$4 sm:$0xff]  }
  0x55   : > { %1119 = vmatpush1.bf16.msra.mxu1 %v1582_v16  ;;  %1077 = vmatprep.subr.bf16.mxu0 %v1583_v17  ;;  %v1624_v44 = vld [vmem:[#allocation5 + $0x1d0] ss:$8 sps:$4 sm:$0xff]   ;;  %v1627_v46 = vld [vmem:[#allocation5 + $0x1c4] ss:$8 sps:$4 sm:$0xff]   ;;  %v1629_v51 = vld [vmem:[#allocation5 + $0xc0] ss:$8 sps:$4 sm:$0xff]  }
  0x56   : > { %1120 = vmatprep.subr.bf16.mxu1 %v1585_v18  ;;  %v266_v47 = vld [vmem:[%s1987_s8 + $0x8] sm:$0xff]  ;;  %v268_v49 = vld [vmem:[%s1987_s8 + $0x18] sm:$0xff]  ;;  %v265_v7 = vld [vmem:[%s1987_s8] sm:$0xff]  ;;  %s1370_s27 = sshll.u32 %s1358_s4, 1  ;;  %vm1278_vm0 = vcmask 7168  }
  0x57   : > { %v274_v48 = vld [vmem:[%s1987_s8 + $0x48] sm:$0xff]  ;;  %v276_v50 = vld [vmem:[%s1987_s8 + $0x58] sm:$0xff]  ;;  %v273_v8 = vld [vmem:[%s1987_s8 + $0x40] sm:$0xff]  ;;  %p260_p5 = scmp.lt.s32.totalorder %s1370_s27, 3 }
  0x58   : > { %1078 = vmatpush1.bf16.msra.mxu0 %v1587_v19  ;;  %v1630_v52 = vld [vmem:[#allocation5 + $0x1c0] ss:$8 sps:$4 sm:$0xff]   ;;  %v1631_v53 = vld [vmem:[#allocation5 + $0xb4] ss:$8 sps:$4 sm:$0xff]   ;;  %v282_v54 = vpack.c.bf16 %v274_v48, %v266_v47  ;;  %v284_v55 = vpack.c.bf16 %v276_v50, %v268_v49  ;;  %v1635_v57 = vld [vmem:[#allocation5 + $0xb0] ss:$8 sps:$4 sm:$0xff]   ;;  %v281_v13 = vpack.c.bf16 %v273_v8, %v265_v7 }
  0x59   : > { %1121 = vmatpush1.bf16.msra.mxu1 %v1588_v20  ;;  %1079 = vmatprep.subr.bf16.mxu0 %v1589_v21  ;;  %v1633_v56 = vld [vmem:[#allocation5 + $0x1b4] ss:$8 sps:$4 sm:$0xff]   ;;  %v1636_v58 = vld [vmem:[#allocation5 + $0x1b0] ss:$8 sps:$4 sm:$0xff]   ;;  %v1637_v59 = vld [vmem:[#allocation5 + $0xa4] ss:$8 sps:$4 sm:$0xff]  }
  0x5a   : > { %1122 = vmatprep.subr.bf16.mxu1 %v1591_v22  ;;  %1101 = vmatprep.mubr.bf16.mxu0 %v282_v54  ;;  %v1639_v60 = vld [vmem:[#allocation5 + $0x1a4] ss:$8 sps:$4 sm:$0xff]   ;;  %v1641_v61 = vld [vmem:[#allocation5 + $0xa0] ss:$8 sps:$4 sm:$0xff]   ;;  %v1643_v63 = vld [vmem:[#allocation5 + $0x94] ss:$8 sps:$4 sm:$0xff]  }
  0x5b   : > { %1144 = vmatprep.mubr.bf16.mxu1 %v284_v55  ;;  %v1642_v62 = vld [vmem:[#allocation5 + $0x1a0] ss:$8 sps:$4 sm:$0xff]   ;;  %v1645_v0 = vld [vmem:[#allocation5 + $0x194] ss:$8 sps:$4 sm:$0xff]   ;;  %v1647_v1 = vld [vmem:[#allocation5 + $0x90] ss:$8 sps:$4 sm:$0xff]  }
  0x5c   : > { %1080 = vmatpush1.bf16.msra.mxu0 %v1593_v23  ;;  %v1648_v2 = vld [vmem:[#allocation5 + $0x190] ss:$8 sps:$4 sm:$0xff]   ;;  %v1649_v3 = vld [vmem:[#allocation5 + $0x84] ss:$8 sps:$4 sm:$0xff]   ;;  %v1653_v5 = vld [vmem:[#allocation5 + $0x80] ss:$8 sps:$4 sm:$0xff]  }
  0x5d   : > { %1123 = vmatpush1.bf16.msra.mxu1 %v1594_v24  ;;  %1081 = vmatprep.subr.bf16.mxu0 %v1595_v25  ;;  %v1651_v4 = vld [vmem:[#allocation5 + $0x184] ss:$8 sps:$4 sm:$0xff]   ;;  %v1654_v6 = vld [vmem:[#allocation5 + $0x180] ss:$8 sps:$4 sm:$0xff]   ;;  %v267_v9 = vld [vmem:[%s1987_s8 + $0x10] sm:$0xff]  ;;  %s2060_s27 = smov (!%p260_p5, %s1370_s27), 3 }
  0x5e   : > { %1124 = vmatprep.subr.bf16.mxu1 %v1597_v26  ;;  %v275_v10 = vld [vmem:[%s1987_s8 + $0x50] sm:$0xff]  ;;  %v1663_v17 = vld [vmem:[#allocation5 + $0x264] ss:$8 sps:$4 sm:$0xff]   ;;  %v1661_v19 = vld [vmem:[#allocation5 + $0x260] ss:$8 sps:$4 sm:$0xff]   ;;  %s1371_s28 = sshll.u32 %s2060_s27, 3 }
  0x5f   : > { %v1657_v11 = vld [vmem:[#allocation5 + $0x274] ss:$8 sps:$4 sm:$0xff]   ;;  %v283_v14 = vpack.c.bf16 %v275_v10, %v267_v9  ;;  %v1655_v15 = vld [vmem:[#allocation5 + $0x270] ss:$8 sps:$4 sm:$0xff]   ;;  %v1666_v18 = vld [vmem:[#allocation5 + $0x364] ss:$8 sps:$4 sm:$0xff]   ;;  %s263_s10 = scalar_lea.vmem %s2042_s5, %s1371_s28 }
  0x60   : > { %1082 = vmatpush1.bf16.msra.mxu0 %v1599_v27  ;;  %v1660_v12 = vld [vmem:[#allocation5 + $0x374] ss:$8 sps:$4 sm:$0xff]   ;;  %v1658_v16 = vld [vmem:[#allocation5 + $0x370] ss:$8 sps:$4 sm:$0xff]   ;;  %v1664_v20 = vld [vmem:[#allocation5 + $0x360] ss:$8 sps:$4 sm:$0xff]  }
  0x61   : > { %1125 = vmatpush1.bf16.msra.mxu1 %v1600_v28  ;;  %1083 = vmatprep.subr.bf16.mxu0 %v1601_v29  ;;  %v1669_v21 = vld [vmem:[#allocation5 + $0x254] ss:$8 sps:$4 sm:$0xff]   ;;  %v1667_v23 = vld [vmem:[#allocation5 + $0x250] ss:$8 sps:$4 sm:$0xff]   ;;  %v1675_v25 = vld [vmem:[#allocation5 + $0x244] ss:$8 sps:$4 sm:$0xff]  }
  0x62   : > { %1126 = vmatprep.subr.bf16.mxu1 %v1603_v30  ;;  %v1672_v22 = vld [vmem:[#allocation5 + $0x354] ss:$8 sps:$4 sm:$0xff]   ;;  %v1670_v24 = vld [vmem:[#allocation5 + $0x350] ss:$8 sps:$4 sm:$0xff]   ;;  %v1678_v26 = vld [vmem:[#allocation5 + $0x344] ss:$8 sps:$4 sm:$0xff]  }
  0x63   : > { %v1673_v27 = vld [vmem:[#allocation5 + $0x240] ss:$8 sps:$4 sm:$0xff]   ;;  %v1681_v29 = vld [vmem:[#allocation5 + $0x234] ss:$8 sps:$4 sm:$0xff]   ;;  %v1706_v54 = vld [vmem:[#allocation5 + $0x3f0] ss:$8 sps:$4 sm:$0xff]  }
  0x64   : > { %1084 = vmatpush1.bf16.msra.mxu0 %v1605_v31  ;;  %v1676_v28 = vld [vmem:[#allocation5 + $0x340] ss:$8 sps:$4 sm:$0xff]   ;;  %v1684_v30 = vld [vmem:[#allocation5 + $0x334] ss:$8 sps:$4 sm:$0xff]   ;;  %v1679_v31 = vld [vmem:[#allocation5 + $0x230] ss:$8 sps:$4 sm:$0xff]  }
  0x65   : > { %1127 = vmatpush1.bf16.msra.mxu1 %v1606_v32  ;;  %1085 = vmatprep.subr.bf16.mxu0 %v1607_v33  ;;  %v1682_v32 = vld [vmem:[#allocation5 + $0x330] ss:$8 sps:$4 sm:$0xff]   ;;  %v1687_v33 = vld [vmem:[#allocation5 + $0x224] ss:$8 sps:$4 sm:$0xff]   ;;  %v1697_v49 = vld [vmem:[#allocation5 + $0x200] ss:$8 sps:$4 sm:$0xff]  }
  0x66   : > { %1128 = vmatprep.subr.bf16.mxu1 %v1609_v34  ;;  %v1690_v34 = vld [vmem:[#allocation5 + $0x324] ss:$8 sps:$4 sm:$0xff]   ;;  %v280_v47 = vld [vmem:[%s1987_s8 + $0x78] sm:$0xff]  ;;  %v1700_v50 = vld [vmem:[#allocation5 + $0x300] ss:$8 sps:$4 sm:$0xff]  }
  0x67   : > { %v1711_v55 = vld [vmem:[#allocation5 + $0x2e4] ss:$8 sps:$4 sm:$0xff]   ;;  %v1733_v9 = vld [vmem:[#allocation5 + $0x2a0] ss:$8 sps:$4 sm:$0xff]  }
  0x68   : > { %1086 = vmatpush2.bf16.msra.mxu0 %v1611_v35  ;;  %v1685_v35 = vld [vmem:[#allocation5 + $0x220] ss:$8 sps:$4 sm:$0xff]   ;;  %v1735_v7 = vld [vmem:[#allocation5 + $0x2a4] ss:$8 sps:$4 sm:$0xff]  }
  0x69   : > { %1129 = vmatpush2.bf16.msra.mxu1 %v1612_v36  ;;  %1087 = vmatprep.subr.bf16.mxu0 %v1613_v37  ;;  %v1688_v36 = vld [vmem:[#allocation5 + $0x320] ss:$8 sps:$4 sm:$0xff]   ;;  %v1693_v37 = vld [vmem:[#allocation5 + $0x214] ss:$8 sps:$4 sm:$0xff]   ;;  %v1738_v8 = vld [vmem:[#allocation5 + $0x3a4] ss:$8 sps:$4 sm:$0xff]  }
  0x6a   : > { %1130 = vmatprep.subr.bf16.mxu1 %v1615_v38  ;;  %v1696_v38 = vld [vmem:[#allocation5 + $0x314] ss:$8 sps:$4 sm:$0xff]   ;;  %v1736_v10 = vld [vmem:[#allocation5 + $0x3a0] ss:$8 sps:$4 sm:$0xff]  }
  0x6c   : > { %1088 = vmatpush2.bf16.msra.mxu0 %v1617_v39  ;;  %v1691_v39 = vld [vmem:[#allocation5 + $0x210] ss:$8 sps:$4 sm:$0xff]  }
  0x6d   : > { %1131 = vmatpush2.bf16.msra.mxu1 %v1618_v40  ;;  %1089 = vmatprep.subr.bf16.mxu0 %v1619_v41  ;;  %v1694_v40 = vld [vmem:[#allocation5 + $0x310] ss:$8 sps:$4 sm:$0xff]   ;;  %v270_v41 = vld [vmem:[%s1987_s8 + $0x28] sm:$0xff] }
  0x6e   : > { %1132 = vmatprep.subr.bf16.mxu1 %v1621_v42  ;;  %v278_v42 = vld [vmem:[%s1987_s8 + $0x68] sm:$0xff] }
  0x70   : > { %1090 = vmatpush2.bf16.msra.mxu0 %v1623_v43  ;;  %v272_v43 = vld [vmem:[%s1987_s8 + $0x38] sm:$0xff] }
  0x71   : > { %1133 = vmatpush2.bf16.msra.mxu1 %v1624_v44  ;;  %1091 = vmatprep.subr.bf16.mxu0 %v1625_v45  ;;  %v1699_v44 = vld [vmem:[#allocation5 + $0x204] ss:$8 sps:$4 sm:$0xff]   ;;  %v288_v48 = vpack.c.bf16 %v280_v47, %v272_v43 }
  0x72   : > { %1134 = vmatprep.subr.bf16.mxu1 %v1627_v46  ;;  %v1702_v45 = vld [vmem:[#allocation5 + $0x304] ss:$8 sps:$4 sm:$0xff]   ;;  %v286_v46 = vpack.c.bf16 %v278_v42, %v270_v41 }
  0x74   : > { %1092 = vmatpush2.bf16.msra.mxu0 %v1629_v51  ;;  %v1705_v51 = vld [vmem:[#allocation5 + $0x2f4] ss:$8 sps:$4 sm:$0xff]  }
  0x75   : > { %1135 = vmatpush2.bf16.msra.mxu1 %v1630_v52  ;;  %1093 = vmatprep.subr.bf16.mxu0 %v1631_v53  ;;  %v1708_v52 = vld [vmem:[#allocation5 + $0x3f4] ss:$8 sps:$4 sm:$0xff]   ;;  %v1703_v53 = vld [vmem:[#allocation5 + $0x2f0] ss:$8 sps:$4 sm:$0xff]  }
  0x76   : > { %1136 = vmatprep.subr.bf16.mxu1 %v1633_v56  ;;  %v1714_v56 = vld [vmem:[#allocation5 + $0x3e4] ss:$8 sps:$4 sm:$0xff]  }
  0x78   : > { %1094 = vmatpush2.bf16.msra.mxu0 %v1635_v57  ;;  %v1709_v57 = vld [vmem:[#allocation5 + $0x2e0] ss:$8 sps:$4 sm:$0xff]  }
  0x79   : > { %1137 = vmatpush2.bf16.msra.mxu1 %v1636_v58  ;;  %1095 = vmatprep.subr.bf16.mxu0 %v1637_v59  ;;  %v1712_v58 = vld [vmem:[#allocation5 + $0x3e0] ss:$8 sps:$4 sm:$0xff]   ;;  %v1717_v59 = vld [vmem:[#allocation5 + $0x2d4] ss:$8 sps:$4 sm:$0xff]  }
  0x7a   : > { %1138 = vmatprep.subr.bf16.mxu1 %v1639_v60  ;;  %v1720_v60 = vld [vmem:[#allocation5 + $0x3d4] ss:$8 sps:$4 sm:$0xff]  }
  0x7c   : > { %1096 = vmatpush2.bf16.msra.mxu0 %v1641_v61  ;;  %v1715_v61 = vld [vmem:[#allocation5 + $0x2d0] ss:$8 sps:$4 sm:$0xff]  }
  0x7d   : > { %1139 = vmatpush2.bf16.msra.mxu1 %v1642_v62  ;;  %1097 = vmatprep.subr.bf16.mxu0 %v1643_v63  ;;  %v1718_v62 = vld [vmem:[#allocation5 + $0x3d0] ss:$8 sps:$4 sm:$0xff]   ;;  %v1723_v63 = vld [vmem:[#allocation5 + $0x2c4] ss:$8 sps:$4 sm:$0xff]  }
  0x7e   : > { %1140 = vmatprep.subr.bf16.mxu1 %v1645_v0  ;;  %v1726_v0 = vld [vmem:[#allocation5 + $0x3c4] ss:$8 sps:$4 sm:$0xff]  }
  0x80   : > { %1098 = vmatpush2.bf16.msra.mxu0 %v1647_v1  ;;  %v1721_v1 = vld [vmem:[#allocation5 + $0x2c0] ss:$8 sps:$4 sm:$0xff]  }
  0x81   : > { %1141 = vmatpush2.bf16.msra.mxu1 %v1648_v2  ;;  %1099 = vmatprep.subr.bf16.mxu0 %v1649_v3  ;;  %v1724_v2 = vld [vmem:[#allocation5 + $0x3c0] ss:$8 sps:$4 sm:$0xff]   ;;  %v1729_v3 = vld [vmem:[#allocation5 + $0x2b4] ss:$8 sps:$4 sm:$0xff]  }
  0x82   : > { %1142 = vmatprep.subr.bf16.mxu1 %v1651_v4  ;;  %v1732_v4 = vld [vmem:[#allocation5 + $0x3b4] ss:$8 sps:$4 sm:$0xff]  }
  0x84   : > { %1100 = vmatpush2.bf16.msra.mxu0 %v1653_v5  ;;  %v1727_v5 = vld [vmem:[#allocation5 + $0x2b0] ss:$8 sps:$4 sm:$0xff]  }
  0x85   : > { %1143 = vmatpush2.bf16.msra.mxu1 %v1654_v6  ;;  %1155 = vmatprep.subr.bf16.mxu0 %v1657_v11  ;;  %v1730_v6 = vld [vmem:[#allocation5 + $0x3b0] ss:$8 sps:$4 sm:$0xff]   ;;  %v1741_v11 = vld [vmem:[#allocation5 + $0x294] ss:$8 sps:$4 sm:$0xff]  }
  0x86   : > { %1198 = vmatprep.subr.bf16.mxu1 %v1660_v12  ;;  %v1744_v12 = vld [vmem:[#allocation5 + $0x394] ss:$8 sps:$4 sm:$0xff]  }
  0x87   : > { %1102 = vmatmul.mubr.bf16.vlgmr.msra.gmra.mxu0 %v281_v13  ;;  %v1739_v13 = vld [vmem:[#allocation5 + $0x290] ss:$8 sps:$4 sm:$0xff]  }
  0x88   : > { %1145 = vmatmul.mubr.bf16.vlgmr.msra.gmra.mxu1 %v283_v14  ;;  %1156 = vmatpush1.bf16.msra.mxu0 %v1655_v15  ;;  %v1742_v14 = vld [vmem:[#allocation5 + $0x390] ss:$8 sps:$4 sm:$0xff]   ;;  %v1747_v15 = vld [vmem:[#allocation5 + $0x284] ss:$8 sps:$4 sm:$0xff]  }
  0x89   : > { %1199 = vmatpush1.bf16.msra.mxu1 %v1658_v16  ;;  %1157 = vmatprep.subr.bf16.mxu0 %v1663_v17  ;;  %v1750_v16 = vld [vmem:[#allocation5 + $0x384] ss:$8 sps:$4 sm:$0xff]   ;;  %v1745_v17 = vld [vmem:[#allocation5 + $0x280] ss:$8 sps:$4 sm:$0xff]  }
  0x8a   : > { %1200 = vmatprep.subr.bf16.mxu1 %v1666_v18  ;;  %1187 = vmatprep.mubr.bf16.mxu0 %v286_v46  ;;  %v1748_v18 = vld [vmem:[#allocation5 + $0x380] ss:$8 sps:$4 sm:$0xff]  }
  0x8b   : > { %1230 = vmatprep.mubr.bf16.mxu1 %v288_v48 }
  0x8c   : > { %1158 = vmatpush1.bf16.msra.mxu0 %v1661_v19  ;;  %v269_v19 = vld [vmem:[%s1987_s8 + $0x20] sm:$0xff] }
  0x8d   : > { %1201 = vmatpush1.bf16.msra.mxu1 %v1664_v20  ;;  %1159 = vmatprep.subr.bf16.mxu0 %v1669_v21  ;;  %v277_v20 = vld [vmem:[%s1987_s8 + $0x60] sm:$0xff]  ;;  %v271_v21 = vld [vmem:[%s1987_s8 + $0x30] sm:$0xff] }
  0x8e   : > { %1202 = vmatprep.subr.bf16.mxu1 %v1672_v22  ;;  %v279_v22 = vld [vmem:[%s1987_s8 + $0x70] sm:$0xff] }
  0x90   : > { %1160 = vmatpush1.bf16.msra.mxu0 %v1667_v23  ;;  %v285_v23 = vpack.c.bf16 %v277_v20, %v269_v19 }
  0x91   : > { %1203 = vmatpush1.bf16.msra.mxu1 %v1670_v24  ;;  %1161 = vmatprep.subr.bf16.mxu0 %v1675_v25  ;;  %v287_v24 = vpack.c.bf16 %v279_v22, %v271_v21  ;;  %v419_v25 = vlaneseq }
  0x92   : > { %1204 = vmatprep.subr.bf16.mxu1 %v1678_v26 }
  0x93   : > { %v420_v26 = vshrl.u32 %v419_v25, 7 }
  0x94   : > { %1162 = vmatpush1.bf16.msra.mxu0 %v1673_v27 }
  0x95   : > { %1205 = vmatpush1.bf16.msra.mxu1 %v1676_v28  ;;  %1163 = vmatprep.subr.bf16.mxu0 %v1681_v29  ;;  %v421_v29 = vsub.s32 0, %v420_v26 }
  0x96   : > { %1206 = vmatprep.subr.bf16.mxu1 %v1684_v30  ;;  %v417_v30 = vld [vmem:[%s2039_s2] sm:$0x3] }
  0x98   : > { %1164 = vmatpush1.bf16.msra.mxu0 %v1679_v31  ;;  %v425_v31 = vsub.s32 1, %v420_v26 }
  0x99   : > { %1207 = vmatpush1.bf16.msra.mxu1 %v1682_v32  ;;  %1165 = vmatprep.subr.bf16.mxu0 %v1687_v33 }
  0x9a   : > { %1208 = vmatprep.subr.bf16.mxu1 %v1690_v34  ;;  %v422_v34 = vrot.slane %v417_v30, %v421_v29 }
  0x9c   : > { %1166 = vmatpush1.bf16.msra.mxu0 %v1685_v35  ;;  %v426_v35 = vrot.slane %v417_v30, %v425_v31 }
  0x9d   : > { %1209 = vmatpush1.bf16.msra.mxu1 %v1688_v36  ;;  %1167 = vmatprep.subr.bf16.mxu0 %v1693_v37 }
  0x9e   : > { %1210 = vmatprep.subr.bf16.mxu1 %v1696_v38 }
  0xa0   : > { %1168 = vmatpush1.bf16.msra.mxu0 %v1691_v39 }
  0xa1   : > { %1211 = vmatpush1.bf16.msra.mxu1 %v1694_v40  ;;  %1169 = vmatprep.subr.bf16.mxu0 %v1699_v44 }
  0xa2   : > { %1212 = vmatprep.subr.bf16.mxu1 %v1702_v45 }
  0xa4   : > { %1170 = vmatpush1.bf16.msra.mxu0 %v1697_v49  ;;  %v1245_v49 = vld [vmem:[%s2040_s3] sm:$0x3] }
  0xa5   : > { %1213 = vmatpush1.bf16.msra.mxu1 %v1700_v50  ;;  %1171 = vmatprep.subr.bf16.mxu0 %v1705_v51 }
  0xa6   : > { %1214 = vmatprep.subr.bf16.mxu1 %v1708_v52 }
  0xa8   : > { %1172 = vmatpush2.bf16.msra.mxu0 %v1703_v53 }
  0xa9   : > { %1215 = vmatpush2.bf16.msra.mxu1 %v1706_v54  ;;  %1173 = vmatprep.subr.bf16.mxu0 %v1711_v55 }
  0xaa   : > { %1216 = vmatprep.subr.bf16.mxu1 %v1714_v56 }
  0xac   : > { %1174 = vmatpush2.bf16.msra.mxu0 %v1709_v57  ;;  %v1250_v57 = vrot.slane %v1245_v49, %v421_v29 }
  0xad   : > { %1217 = vmatpush2.bf16.msra.mxu1 %v1712_v58  ;;  %1175 = vmatprep.subr.bf16.mxu0 %v1717_v59  ;;  %v1254_v58 = vrot.slane %v1245_v49, %v425_v31 }
  0xae   : > { %1218 = vmatprep.subr.bf16.mxu1 %v1720_v60 }
  0xb0   : > { %1176 = vmatpush2.bf16.msra.mxu0 %v1715_v61 }
  0xb1   : > { %1219 = vmatpush2.bf16.msra.mxu1 %v1718_v62  ;;  %1177 = vmatprep.subr.bf16.mxu0 %v1723_v63 }
  0xb2   : > { %1220 = vmatprep.subr.bf16.mxu1 %v1726_v0 }
  0xb4   : > { %1178 = vmatpush2.bf16.msra.mxu0 %v1721_v1 }
  0xb5   : > { %1221 = vmatpush2.bf16.msra.mxu1 %v1724_v2  ;;  %1179 = vmatprep.subr.bf16.mxu0 %v1729_v3 }
  0xb6   : > { %1222 = vmatprep.subr.bf16.mxu1 %v1732_v4 }
  0xb8   : > { %1180 = vmatpush2.bf16.msra.mxu0 %v1727_v5 }
  0xb9   : > { %1223 = vmatpush2.bf16.msra.mxu1 %v1730_v6  ;;  %1181 = vmatprep.subr.bf16.mxu0 %v1735_v7 }
  0xba   : > { %1224 = vmatprep.subr.bf16.mxu1 %v1738_v8 }
  0xbc   : > { %1182 = vmatpush2.bf16.msra.mxu0 %v1733_v9 }
  0xbd   : > { %1225 = vmatpush2.bf16.msra.mxu1 %v1736_v10  ;;  %1183 = vmatprep.subr.bf16.mxu0 %v1741_v11 }
  0xbe   : > { %1226 = vmatprep.subr.bf16.mxu1 %v1744_v12 }
  0xc0   : > { %1184 = vmatpush2.bf16.msra.mxu0 %v1739_v13  ;;  %v1500_v13 = vld [vmem:[#allocation2] ss:$0 sm:$0xff] }
  0xc1   : > { %1227 = vmatpush2.bf16.msra.mxu1 %v1742_v14  ;;  %1185 = vmatprep.subr.bf16.mxu0 %v1747_v15 }
  0xc2   : > { %1228 = vmatprep.subr.bf16.mxu1 %v1750_v16 }
  0xc4   : > { %1186 = vmatpush2.bf16.msra.mxu0 %v1745_v17 }
  0xc5   : > { %1229 = vmatpush2.bf16.msra.mxu1 %v1748_v18 }
  0xc7   : > { %1188 = vmatmul.mubr.bf16.vlgmr.msra.gmra.mxu0 %v285_v23 }
  0xc8   : > { %1231 = vmatmul.mubr.bf16.vlgmr.msra.gmra.mxu1 %v287_v24 }
 0x147   : > { %v1103_v27 = vpop.f32.mrf.mxu0 }
 0x148   : > { %v1146_v28 = vpop.f32.mrf.mxu1  ;;  %v1104_v38 = vadd.f32 %v1103_v27, %v422_v34 }
 0x149   : > { %v1105_v32 = vpop.f32.mrf.mxu0 }
 0x14a   : > { %v1148_v33 = vpop.f32.mrf.mxu1  ;;  %v1106_v39 = vadd.f32 %v1105_v32, %v426_v35  ;;  %v1147_v42 = vadd.f32 %v1146_v28, %v1104_v38 }
 0x14b   : > { %v1107_v36 = vpop.f32.mrf.mxu0 }
 0x14c   : > { %v1150_v37 = vpop.f32.mrf.mxu1  ;;  %v1108_v43 = vadd.f32 %v1107_v36, %v422_v34  ;;  %v1149_v46 = vadd.f32 %v1148_v33, %v1106_v39 }
 0x14d   : > { %v1109_v40 = vpop.f32.mrf.mxu0 }
 0x14e   : > { %v1152_v41 = vpop.f32.mrf.mxu1  ;;  %v1110_v47 = vadd.f32 %v1109_v40, %v426_v35  ;;  %v1151_v52 = vadd.f32 %v1150_v37, %v1108_v43 }
 0x150   : > { %v1153_v59 = vadd.f32 %v1152_v41, %v1110_v47 }
 0x187   : > { %v1189_v44 = vpop.f32.mrf.mxu0 }
 0x188   : > { %v1232_v45 = vpop.f32.mrf.mxu1  ;;  %v1190_v48 = vadd.f32 %v1189_v44, %v1147_v42 }
 0x189   : > { %v1191_v50 = vpop.f32.mrf.mxu0 }
 0x18a   : > { %v1234_v51 = vpop.f32.mrf.mxu1  ;;  %v1233_v53 = vadd.f32 %v1232_v45, %v1190_v48  ;;  %v1192_v54 = vadd.f32 %v1191_v50, %v1149_v46 }
 0x18b   : > { %v1193_v55 = vpop.f32.mrf.mxu0 }
 0x18c   : > { %v1236_v56 = vpop.f32.mrf.mxu1  ;;  %v1241_v60 = vmax.f32 %v1233_v53, 0.0  ;;  %v1235_v61 = vadd.f32 %v1234_v51, %v1192_v54  ;;  %v1194_v62 = vadd.f32 %v1193_v55, %v1151_v52 }
 0x18d   : > { %v1195_v63 = vpop.f32.mrf.mxu0 }
 0x18e   : > { %v1242_v0 = vmax.f32 %v1235_v61, 0.0  ;;  %v1237_v1 = vadd.f32 %v1236_v56, %v1194_v62  ;;  %v1196_v2 = vadd.f32 %v1195_v63, %v1153_v59  ;;  %v1238_v3 = vpop.f32.mrf.mxu1  ;;  %v1257_v6 = vmul.f32 %v1250_v57, %v1241_v60 }
 0x190   : > { %v1243_v4 = vmax.f32 %v1237_v1, 0.0  ;;  %v1239_v5 = vadd.f32 %v1238_v3, %v1196_v2  ;;  %v1258_v7 = vmul.f32 %v1254_v58, %v1242_v0 }
 0x192   : > { %v1244_v8 = vmax.f32 %v1239_v5, 0.0  ;;  %v1261_v9 = vadd.f32 %v1258_v7, %v1257_v6  ;;  %v1259_v10 = vmul.f32 %v1250_v57, %v1243_v4 }
 0x194   : > { %v1260_v11 = vmul.f32 %v1254_v58, %v1244_v8  ;;  %1262 = vadd.xlane.f32.xlu0 %v1261_v9 }
 0x196   : > { %v1264_v12 = vadd.f32 %v1260_v11, %v1259_v10 }
 0x198   : > { %1265 = vadd.xlane.f32.xlu0 %v1264_v12 }
 0x21d   : > { %v1263_v14 = vpop.xlane.xlu0 %1262 }
 0x21e   : > { %v1274_v15 = vadd.f32 %v1500_v13, %v1263_v14 }
 0x220   : > { %v1276_v16 = vmax.f32 %v1274_v15, 0.0 }
 0x221   : > { %v1266_v17 = vpop.xlane.xlu0 %1265 }
 0x222   : > { %1279 = vst.msk [vmem:[%s263_s10] sm:$0xff] %vm1278_vm0, %v1276_v16  ;;  %v1275_v18 = vadd.f32 %v1500_v13, %v1266_v17 }
 0x224   : > { %v1277_v19 = vmax.f32 %v1275_v18, 0.0 }
 0x226   : > { %1280 = vst.msk [vmem:[%s263_s10 + $0x8] sm:$0xff] %vm1278_vm0, %v1277_v19 }
 0x227 PF: > { %p18_p7 = scmp.ge.s32.totalorder %s1931_s30, 4   ;;  %s2055_s20 = smov %s1835_s21 }
 0x228   : > { %s2056_s21 = smov %s1839_s22  ;;  %s2057_s22 = smov %s1948_s13 }
 0x229   : > { %s2058_s23 = smov %s1931_s30  ;;  %20 = sbr.rel (!%p18_p7) target bundleno = 7 (0x7), region = 84 }
 0x22e   :  { %1303 = vsyncpa [#allocation4], 1 }
 0x22f   :  { %1305 = vsyncpa [#allocation4 + $0x1], 1 }
 0x230   :  { %1306 = vsyncpa [#allocation6], 1 }

</bundles_post_ra>
